<compile_context>
chip_gen: v7x
topology: tpu7x:2x2x1
jax: 0.10.0
libtpu: 0.0.40
codegen_flags: <defaults>
</compile_context>

<pallas_src>
import jax
import jax.numpy as jnp
from jax.experimental import pallas as pl
from jax.experimental.pallas import tpu as pltpu


D_IN, D1, D2, D3, D_OUT = 784, 128, 256, 512, 10
D_OUT_PAD = 128                    # lane-dense output block; wrapper slices [:, :10]
_VMEM_LIMIT_BYTES = 48 * 1024 * 1024


def _round_up(x, m):
    return ((x + m - 1) // m) * m


def _choose_bm(B):
    """Batch tile: big enough to amortize per-grid-step overhead, but split a
    single large tile in two so ("parallel",) can use both v7x TensorCores."""
    b8 = _round_up(B, 8)
    bm = min(1024, b8)
    if b8 > 512 and b8 <= bm:      # would be one giant tile -> make 2 grid steps
        bm = _round_up((b8 + 1) // 2, 8)
    return bm


def _mlp_kernel(x_ref,
                w1_ref, b1_ref,
                w2_ref, b2_ref,
                w3_ref, b3_ref,
                w4_ref, b4_ref,
                o_ref):
    # All matmuls are bf16 x bf16 -> f32 on the MXU; bias + ReLU in f32 on the VPU.
    h = jnp.dot(x_ref[...], w1_ref[...], preferred_element_type=jnp.float32)
    h = jnp.maximum(h + b1_ref[...], 0.0).astype(jnp.bfloat16)
    h = jnp.dot(h, w2_ref[...], preferred_element_type=jnp.float32)
    h = jnp.maximum(h + b2_ref[...], 0.0).astype(jnp.bfloat16)
    h = jnp.dot(h, w3_ref[...], preferred_element_type=jnp.float32)
    h = jnp.maximum(h + b3_ref[...], 0.0).astype(jnp.bfloat16)
    h = jnp.dot(h, w4_ref[...], preferred_element_type=jnp.float32)
    # ReLU after the last layer too, exactly as in the PyTorch module.
    # bf16 store halves the output HBM stream; block stays 128 lanes (no vst.msk).
    o_ref[...] = jnp.maximum(h + b4_ref[...], 0.0).astype(o_ref.dtype)


def _build_call(b_pad, bm):
    def wspec(shape):
        # Grid-invariant weight/bias blocks: constant block index -> resident
        # across the grid (default double-buffering; total < 1.3 MiB).
        return pl.BlockSpec(shape, lambda i: (0, 0))

    w_elems = D_IN * D1 + D1 * D2 + D2 * D3 + D3 * D_OUT_PAD
    flops = 2 * b_pad * w_elems
    bytes_accessed = (b_pad * D_IN * 2                    # x (bf16)
                      + w_elems * 2                       # weights (bf16)
                      + (D1 + D2 + D3 + D_OUT_PAD) * 4    # biases (f32)
                      + b_pad * D_OUT_PAD * 2)            # output (bf16)

    return pl.pallas_call(
        _mlp_kernel,
        out_shape=jax.ShapeDtypeStruct((b_pad, D_OUT_PAD), jnp.bfloat16),
        grid_spec=pltpu.PrefetchScalarGridSpec(
            num_scalar_prefetch=0,
            grid=(b_pad // bm,),
            in_specs=[
                pl.BlockSpec((bm, D_IN), lambda i: (i, 0)),   # x tile, no K pad
                wspec((D_IN, D1)), wspec((1, D1)),
                wspec((D1, D2)),   wspec((1, D2)),
                wspec((D2, D3)),   wspec((1, D3)),
                wspec((D3, D_OUT_PAD)), wspec((1, D_OUT_PAD)),
            ],
            out_specs=pl.BlockSpec((bm, D_OUT_PAD), lambda i: (i, 0)),
        ),
        compiler_params=pltpu.CompilerParams(
            dimension_semantics=("parallel",),
            vmem_limit_bytes=_VMEM_LIMIT_BYTES,
        ),
        cost_estimate=pl.CostEstimate(
            flops=flops, transcendentals=0, bytes_accessed=bytes_accessed),
    )


def prepare_params(params):
    """One-time parameter prep (bf16 cast, head padding) hoisted out of the
    per-call forward path. Call once and reuse the returned pytree."""
    return {
        "W1": params["W1"].astype(jnp.bfloat16),
        "W2": params["W2"].astype(jnp.bfloat16),
        "W3": params["W3"].astype(jnp.bfloat16),
        "W4": jnp.zeros((D3, D_OUT_PAD), jnp.bfloat16).at[:, :D_OUT].set(
            params["W4"].astype(jnp.bfloat16)),
        "b1": params["b1"].astype(jnp.float32),
        "b2": params["b2"].astype(jnp.float32),
        "b3": params["b3"].astype(jnp.float32),
        "b4": jnp.zeros((1, D_OUT_PAD), jnp.float32).at[:, :D_OUT].set(
            params["b4"].astype(jnp.float32)),
    }


@jax.jit
def model_parallel_cnn_forward(x, prep):
    """Fused MLP forward. x: (B, 784) f32. prep: output of prepare_params()."""
    B = x.shape[0]
    bm = _choose_bm(B)
    b_pad = _round_up(B, bm)

    x_bf = x.astype(jnp.bfloat16)
    if b_pad != B:
        x_bf = jnp.pad(x_bf, ((0, b_pad - B), (0, 0)))

    out_p = _build_call(b_pad, bm)(
        x_bf,
        prep["W1"], prep["b1"],
        prep["W2"], prep["b2"],
        prep["W3"], prep["b3"],
        prep["W4"], prep["b4"],
    )
    return out_p[:B, :D_OUT].astype(jnp.float32)


def init_params(key):
    """Deterministic init mimicking nn.Linear: U(-1/sqrt(fan_in), 1/sqrt(fan_in)).
    Weights stored as (in, out) (transposed vs. PyTorch's (out, in))."""
    dims = [(D_IN, D1), (D1, D2), (D2, D3), (D3, D_OUT)]
    params = {}
    keys = jax.random.split(key, 2 * len(dims))
    for l, (din, dout) in enumerate(dims, start=1):
        bound = 1.0 / (din ** 0.5)
        wk, bk = keys[2 * (l - 1)], keys[2 * (l - 1) + 1]
        params[f"W{l}"] = jax.random.uniform(
            wk, (din, dout), jnp.float32, minval=-bound, maxval=bound)
        params[f"b{l}"] = jax.random.uniform(
            bk, (1, dout), jnp.float32, minval=-bound, maxval=bound)
    return params


def _reference_forward_f32(x, params):
    h = x
    for l in range(1, 5):
        h = jnp.maximum(jnp.dot(h, params[f"W{l}"]) + params[f"b{l}"], 0.0)
    return h


def _reference_forward_bf16(x, params):
    """Emulates the kernel numerics: bf16 operands, f32 accumulation, f32 bias/ReLU."""
    h = x.astype(jnp.bfloat16)
    for l in range(1, 5):
        w = params[f"W{l}"].astype(jnp.bfloat16)
        h = jnp.dot(h, w, preferred_element_type=jnp.float32) + params[f"b{l}"]
        h = jnp.maximum(h, 0.0)
        if l < 4:
            h = h.astype(jnp.bfloat16)
    return h


if __name__ == "__main__":
    key = jax.random.PRNGKey(0)
    pkey, xkey = jax.random.split(key)
    params = init_params(pkey)
    prep = prepare_params(params)          # one-time cast/pad, reused per call

    B = 8  # small demo batch (overhead-bound at this size; kernel scales with B)
    x = jax.random.normal(xkey, (B, D_IN), jnp.float32)

    out = model_parallel_cnn_forward(x, prep)
    out = jax.block_until_ready(out)
    assert out.shape == (B, D_OUT)

    # Check against a plain-JAX reference with matching bf16/f32 numerics
    # (kernel additionally stores the final layer as bf16 -> slightly looser tol).
    ref_bf16 = _reference_forward_bf16(x, params)
    assert jnp.allclose(out, ref_bf16, atol=1.5e-2, rtol=1.5e-2), \
        "mismatch vs bf16-matched reference"

    # Informational only: distance from the pure-f32 reference (bf16 quantization).
    ref_f32 = _reference_forward_f32(x, params)
    _ = float(jnp.max(jnp.abs(out - ref_f32)))

    print("KERNEL_OK")
</pallas_src>

<mosaic_0001>
module attributes {stable_mosaic.version = 11 : i64} {
  func.func @_mlp_kernel(%arg0: i32, %arg1: memref<8x784xbf16, #tpu.memory_space<vmem>>, %arg2: memref<784x128xbf16, #tpu.memory_space<vmem>>, %arg3: memref<1x128xf32, #tpu.memory_space<vmem>>, %arg4: memref<128x256xbf16, #tpu.memory_space<vmem>>, %arg5: memref<1x256xf32, #tpu.memory_space<vmem>>, %arg6: memref<256x512xbf16, #tpu.memory_space<vmem>>, %arg7: memref<1x512xf32, #tpu.memory_space<vmem>>, %arg8: memref<512x128xbf16, #tpu.memory_space<vmem>>, %arg9: memref<1x128xf32, #tpu.memory_space<vmem>>, %arg10: memref<8x128xbf16, #tpu.memory_space<vmem>>) attributes {dimension_semantics = [#tpu.dimension_semantics<parallel>], iteration_bounds = array<i64: 1>, scalar_prefetch = 0 : i64, scratch_operands = 0 : i64, tpu.core_type = #tpu.core_type<tc>, window_params = [{transform_indices = @transform_0, window_bounds = array<i64: 8, 784>}, {pipeline_mode = #tpu.pipeline_mode<synchronous>, transform_indices = @transform_1, window_bounds = array<i64: 784, 128>}, {pipeline_mode = #tpu.pipeline_mode<synchronous>, transform_indices = @transform_2, window_bounds = array<i64: 1, 128>}, {pipeline_mode = #tpu.pipeline_mode<synchronous>, transform_indices = @transform_3, window_bounds = array<i64: 128, 256>}, {pipeline_mode = #tpu.pipeline_mode<synchronous>, transform_indices = @transform_4, window_bounds = array<i64: 1, 256>}, {pipeline_mode = #tpu.pipeline_mode<synchronous>, transform_indices = @transform_5, window_bounds = array<i64: 256, 512>}, {pipeline_mode = #tpu.pipeline_mode<synchronous>, transform_indices = @transform_6, window_bounds = array<i64: 1, 512>}, {pipeline_mode = #tpu.pipeline_mode<synchronous>, transform_indices = @transform_7, window_bounds = array<i64: 512, 128>}, {pipeline_mode = #tpu.pipeline_mode<synchronous>, transform_indices = @transform_8, window_bounds = array<i64: 1, 128>}, {transform_indices = @transform_9, window_bounds = array<i64: 8, 128>}]} {
    %c0 = arith.constant 0 : index
    %c0_0 = arith.constant 0 : index
    %0 = vector.load %arg1[%c0, %c0_0] : memref<8x784xbf16, #tpu.memory_space<vmem>>, vector<8x784xbf16>
    %c0_1 = arith.constant 0 : index
    %c0_2 = arith.constant 0 : index
    %1 = vector.load %arg2[%c0_1, %c0_2] : memref<784x128xbf16, #tpu.memory_space<vmem>>, vector<784x128xbf16>
    %cst = arith.constant dense<0.000000e+00> : vector<8x128xf32>
    %2 = tpu.matmul %0, %1, %cst {dimension_numbers = #tpu.dot_dimension_numbers<[1], [0], [0], [1], [0, 0, 1, 1], [], []>} : vector<8x784xbf16>, vector<784x128xbf16>, vector<8x128xf32> -> vector<8x128xf32>
    %c0_3 = arith.constant 0 : index
    %c0_4 = arith.constant 0 : index
    %3 = vector.load %arg3[%c0_3, %c0_4] : memref<1x128xf32, #tpu.memory_space<vmem>>, vector<1x128xf32>
    %4 = vector.broadcast %3 : vector<1x128xf32> to vector<8x128xf32>
    %5 = arith.addf %2, %4 : vector<8x128xf32>
    %cst_5 = arith.constant 0.000000e+00 : f32
    %6 = vector.broadcast %cst_5 : f32 to vector<8x128xf32>
    %7 = arith.maximumf %5, %6 : vector<8x128xf32>
    %8 = arith.truncf %7 : vector<8x128xf32> to vector<8x128xbf16>
    %c0_6 = arith.constant 0 : index
    %c0_7 = arith.constant 0 : index
    %9 = vector.load %arg4[%c0_6, %c0_7] : memref<128x256xbf16, #tpu.memory_space<vmem>>, vector<128x256xbf16>
    %cst_8 = arith.constant dense<0.000000e+00> : vector<8x256xf32>
    %10 = tpu.matmul %8, %9, %cst_8 {dimension_numbers = #tpu.dot_dimension_numbers<[1], [0], [0], [1], [0, 0, 1, 1], [], []>} : vector<8x128xbf16>, vector<128x256xbf16>, vector<8x256xf32> -> vector<8x256xf32>
    %c0_9 = arith.constant 0 : index
    %c0_10 = arith.constant 0 : index
    %11 = vector.load %arg5[%c0_9, %c0_10] : memref<1x256xf32, #tpu.memory_space<vmem>>, vector<1x256xf32>
    %12 = vector.broadcast %11 : vector<1x256xf32> to vector<8x256xf32>
    %13 = arith.addf %10, %12 : vector<8x256xf32>
    %cst_11 = arith.constant 0.000000e+00 : f32
    %14 = vector.broadcast %cst_11 : f32 to vector<8x256xf32>
    %15 = arith.maximumf %13, %14 : vector<8x256xf32>
    %16 = arith.truncf %15 : vector<8x256xf32> to vector<8x256xbf16>
    %c0_12 = arith.constant 0 : index
    %c0_13 = arith.constant 0 : index
    %17 = vector.load %arg6[%c0_12, %c0_13] : memref<256x512xbf16, #tpu.memory_space<vmem>>, vector<256x512xbf16>
    %cst_14 = arith.constant dense<0.000000e+00> : vector<8x512xf32>
    %18 = tpu.matmul %16, %17, %cst_14 {dimension_numbers = #tpu.dot_dimension_numbers<[1], [0], [0], [1], [0, 0, 1, 1], [], []>} : vector<8x256xbf16>, vector<256x512xbf16>, vector<8x512xf32> -> vector<8x512xf32>
    %c0_15 = arith.constant 0 : index
    %c0_16 = arith.constant 0 : index
    %19 = vector.load %arg7[%c0_15, %c0_16] : memref<1x512xf32, #tpu.memory_space<vmem>>, vector<1x512xf32>
    %20 = vector.broadcast %19 : vector<1x512xf32> to vector<8x512xf32>
    %21 = arith.addf %18, %20 : vector<8x512xf32>
    %cst_17 = arith.constant 0.000000e+00 : f32
    %22 = vector.broadcast %cst_17 : f32 to vector<8x512xf32>
    %23 = arith.maximumf %21, %22 : vector<8x512xf32>
    %24 = arith.truncf %23 : vector<8x512xf32> to vector<8x512xbf16>
    %c0_18 = arith.constant 0 : index
    %c0_19 = arith.constant 0 : index
    %25 = vector.load %arg8[%c0_18, %c0_19] : memref<512x128xbf16, #tpu.memory_space<vmem>>, vector<512x128xbf16>
    %cst_20 = arith.constant dense<0.000000e+00> : vector<8x128xf32>
    %26 = tpu.matmul %24, %25, %cst_20 {dimension_numbers = #tpu.dot_dimension_numbers<[1], [0], [0], [1], [0, 0, 1, 1], [], []>} : vector<8x512xbf16>, vector<512x128xbf16>, vector<8x128xf32> -> vector<8x128xf32>
    %c0_21 = arith.constant 0 : index
    %c0_22 = arith.constant 0 : index
    %27 = vector.load %arg9[%c0_21, %c0_22] : memref<1x128xf32, #tpu.memory_space<vmem>>, vector<1x128xf32>
    %28 = vector.broadcast %27 : vector<1x128xf32> to vector<8x128xf32>
    %29 = arith.addf %26, %28 : vector<8x128xf32>
    %cst_23 = arith.constant 0.000000e+00 : f32
    %30 = vector.broadcast %cst_23 : f32 to vector<8x128xf32>
    %31 = arith.maximumf %29, %30 : vector<8x128xf32>
    %32 = arith.truncf %31 : vector<8x128xf32> to vector<8x128xbf16>
    %c0_24 = arith.constant 0 : index
    %c0_25 = arith.constant 0 : index
    %33 = vector.load %arg10[%c0_24, %c0_25] : memref<8x128xbf16, #tpu.memory_space<vmem>>, vector<8x128xbf16>
    tpu.vector_store %arg10[%c0_24, %c0_25], %32 {strides = array<i32>} : memref<8x128xbf16, #tpu.memory_space<vmem>>, vector<8x128xbf16>,
    return
  }
  func.func @transform_0(%arg0: i32) -> (i32, i32) {
    %c0_i32 = arith.constant 0 : i32
    %c0_i32_0 = arith.constant 0 : i32
    return %arg0, %c0_i32 : i32, i32
  }
  func.func @transform_1(%arg0: i32) -> (i32, i32) {
    %c0_i32 = arith.constant 0 : i32
    %c0_i32_0 = arith.constant 0 : i32
    %c0_i32_1 = arith.constant 0 : i32
    return %c0_i32, %c0_i32_0 : i32, i32
  }
  func.func @transform_2(%arg0: i32) -> (i32, i32) {
    %c0_i32 = arith.constant 0 : i32
    %c0_i32_0 = arith.constant 0 : i32
    %c0_i32_1 = arith.constant 0 : i32
    return %c0_i32, %c0_i32_0 : i32, i32
  }
  func.func @transform_3(%arg0: i32) -> (i32, i32) {
    %c0_i32 = arith.constant 0 : i32
    %c0_i32_0 = arith.constant 0 : i32
    %c0_i32_1 = arith.constant 0 : i32
    return %c0_i32, %c0_i32_0 : i32, i32
  }
  func.func @transform_4(%arg0: i32) -> (i32, i32) {
    %c0_i32 = arith.constant 0 : i32
    %c0_i32_0 = arith.constant 0 : i32
    %c0_i32_1 = arith.constant 0 : i32
    return %c0_i32, %c0_i32_0 : i32, i32
  }
  func.func @transform_5(%arg0: i32) -> (i32, i32) {
    %c0_i32 = arith.constant 0 : i32
    %c0_i32_0 = arith.constant 0 : i32
    %c0_i32_1 = arith.constant 0 : i32
    return %c0_i32, %c0_i32_0 : i32, i32
  }
  func.func @transform_6(%arg0: i32) -> (i32, i32) {
    %c0_i32 = arith.constant 0 : i32
    %c0_i32_0 = arith.constant 0 : i32
    %c0_i32_1 = arith.constant 0 : i32
    return %c0_i32, %c0_i32_0 : i32, i32
  }
  func.func @transform_7(%arg0: i32) -> (i32, i32) {
    %c0_i32 = arith.constant 0 : i32
    %c0_i32_0 = arith.constant 0 : i32
    %c0_i32_1 = arith.constant 0 : i32
    return %c0_i32, %c0_i32_0 : i32, i32
  }
  func.func @transform_8(%arg0: i32) -> (i32, i32) {
    %c0_i32 = arith.constant 0 : i32
    %c0_i32_0 = arith.constant 0 : i32
    %c0_i32_1 = arith.constant 0 : i32
    return %c0_i32, %c0_i32_0 : i32, i32
  }
  func.func @transform_9(%arg0: i32) -> (i32, i32) {
    %c0_i32 = arith.constant 0 : i32
    %c0_i32_0 = arith.constant 0 : i32
    return %arg0, %c0_i32 : i32, i32
  }
}

</mosaic_0001>

<bundles_post_ra>
// kernel: model_parallel_cnn_forward.1
= control target key start
LH: loop header
LB: loop body
LE: loop exit
PB: predicated region body
PF: predicated region fallthrough
CT: control target
= control target key end

     0   :  { %14 = vsyncpa [#allocation3], 0  ;;  %s2445_s0 = inlined_call_operand.vmem [shape: bf16[8,784], index: 0, kind: input, shape index: {}]   ;;  %s2446_s1 = inlined_call_operand.hbm [shape: bf16[784,128], index: 1, kind: input, shape index: {}]   ;;  %s2447_s2 = inlined_call_operand.vmem [shape: f32[1,128], index: 2, kind: input, shape index: {}]   ;;  %s2448_s3 = inlined_call_operand.hbm [shape: bf16[128,256], index: 3, kind: input, shape index: {}]   ;;  %s2449_s4 = inlined_call_operand.vmem [shape: f32[1,256], index: 4, kind: input, shape index: {}]   ;;  %s2450_s5 = inlined_call_operand.hbm [shape: bf16[256,512], index: 5, kind: input, shape index: {}]   ;;  %s2451_s6 = inlined_call_operand.vmem [shape: f32[1,512], index: 6, kind: input, shape index: {}]   ;;  %s2452_s7 = inlined_call_operand.hbm [shape: bf16[512,128], index: 7, kind: input, shape index: {}]   ;;  %s2453_s8 = inlined_call_operand.vmem [shape: f32[1,128], index: 8, kind: input, shape index: {}]   ;;  %s2454_s9 = inlined_call_operand.vmem [shape: bf16[8,128], index: 9, kind: output, shape index: {}]  }
   0x1   :  { %15 = vsyncpa [#allocation5], 0 }
   0x2   :  { %16 = vsyncpa [#allocation8], 0  ;;  %s2287_s30 = smov [#allocation4]   ;;  %s2193_s13 = scalar_lea.hbm %s2448_s3, 2048 }
   0x3   :  { %s38_s10 = sshll.u32 %s2287_s30, 4  ;;  %p2194_p0 = scmp.ne.s32.totalorder %s2448_s3, %s2193_s13  ;;  %s39_s10 = int_to_ptr.vmem [resolvable:$true] %s38_s10 }
   0x4   :  { %p2197_p1 = scmp.lt.u32.totalorder %s2193_s13, %s2448_s3 }
   0x6   :  { %p2199_p2 = pnand %p2197_p1, %p2194_p0 }
   0x8   :  { %2202 = shalt.err (!%p2199_p2)
}
   0x9   :  { %s2203_s18 = scalar_lea.vmem %s39_s10, 2048  ;;  %p2208_p4 = scmp.lt.s32.totalorder %s39_s10, %s39_s10 }
   0xa   :  { %p2204_p3 = scmp.ne.s32.totalorder %s39_s10, %s2203_s18  ;;  %p2209_p5 = scmp.lt.s32.totalorder %s2203_s18, %s2203_s18 }
   0xc   :  { %p2210_p6 = por %p2209_p5, %p2208_p4 }
   0xe   :  { %p2211_p7 = pnand %p2210_p6, %p2204_p3 }
  0x10   :  { %2214 = shalt.err (!%p2211_p7)
}
  0x11   :  { %s2288_s19 = smov 128   ;;  %s2289_s20 = smov 8  }
  0x12   :  { %44 = dma.hbm_to_vmem [thread:$0]  %s2448_s3, 2048, %s39_s10, [#allocation5], %s2288_s19, %s2288_s19, %s2289_s20  }
  0x13   :  { %s2290_s23 = smov [#allocation2]   ;;  %s2215_s27 = scalar_lea.hbm %s2446_s1, 6272 }
  0x14   :  { %s24_s24 = sshll.u32 %s2290_s23, 4  ;;  %p2216_p8 = scmp.ne.s32.totalorder %s2446_s1, %s2215_s27  ;;  %s25_s24 = int_to_ptr.vmem [resolvable:$true] %s24_s24 }
  0x15   :  { %p2219_p9 = scmp.lt.u32.totalorder %s2215_s27, %s2446_s1 }
  0x17   :  { %p2221_p10 = pnand %p2219_p9, %p2216_p8 }
  0x19   :  { %2224 = shalt.err (!%p2221_p10)
}
  0x1a   :  { %s2225_s12 = scalar_lea.vmem %s25_s24, 6272  ;;  %p2230_p12 = scmp.lt.s32.totalorder %s25_s24, %s25_s24 }
  0x1b   :  { %p2226_p11 = scmp.ne.s32.totalorder %s25_s24, %s2225_s12  ;;  %p2231_p13 = scmp.lt.s32.totalorder %s2225_s12, %s2225_s12 }
  0x1d   :  { %p2232_p0 = por %p2231_p13, %p2230_p12 }
  0x1f   :  { %p2233_p1 = pnand %p2232_p0, %p2226_p11 }
  0x21   :  { %2236 = shalt.err (!%p2233_p1)
}
  0x22   :  { %s2291_s3 = smov 64   ;;  %s2292_s10 = smov 4  }
  0x23   :  { %30 = dma.hbm_to_vmem [thread:$0]  %s2446_s1, 6272, %s25_s24, [#allocation3], %s2291_s3, %s2291_s3, %s2292_s10  }
  0x24   :  { %s2293_s15 = smov [#allocation6]   ;;  %s2237_s19 = scalar_lea.hbm %s2450_s5, 8192 }
  0x25   :  { %s52_s16 = sshll.u32 %s2293_s15, 4  ;;  %p2238_p2 = scmp.ne.s32.totalorder %s2450_s5, %s2237_s19  ;;  %s53_s16 = int_to_ptr.vmem [resolvable:$true] %s52_s16 }
  0x26   :  { %p2241_p3 = scmp.lt.u32.totalorder %s2237_s19, %s2450_s5 }
  0x28   :  { %p2243_p4 = pnand %p2241_p3, %p2238_p2 }
  0x2a   :  { %2246 = shalt.err (!%p2243_p4)
}
  0x2b   :  { %s2247_s25 = scalar_lea.vmem %s53_s16, 8192  ;;  %p2252_p6 = scmp.lt.s32.totalorder %s53_s16, %s53_s16 }
  0x2c   :  { %p2248_p5 = scmp.ne.s32.totalorder %s53_s16, %s2247_s25  ;;  %p2253_p7 = scmp.lt.s32.totalorder %s2247_s25, %s2247_s25 }
  0x2e   :  { %p2254_p8 = por %p2253_p7, %p2252_p6 }
  0x30   :  { %p2255_p9 = pnand %p2254_p8, %p2248_p5 }
  0x32   :  { %2258 = shalt.err (!%p2255_p9)
}
  0x33   :  { %s2294_s1 = smov 256   ;;  %s2295_s24 = smov 16  }
  0x34   :  { %58 = dma.hbm_to_vmem [thread:$0]  %s2450_s5, 8192, %s53_s16, [#allocation5], %s2294_s1, %s2294_s1, %s2295_s24  }
  0x35   :  { %s2296_s28 = smov [#allocation7]   ;;  %s2259_s12 = scalar_lea.hbm %s2452_s7, 4096 }
  0x36   :  { %s66_s29 = sshll.u32 %s2296_s28, 4  ;;  %p2260_p10 = scmp.ne.s32.totalorder %s2452_s7, %s2259_s12  ;;  %s67_s29 = int_to_ptr.vmem [resolvable:$true] %s66_s29 }
  0x37   :  { %p2263_p11 = scmp.lt.u32.totalorder %s2259_s12, %s2452_s7 }
  0x39   :  { %p2265_p12 = pnand %p2263_p11, %p2260_p10 }
  0x3b   :  { %2268 = shalt.err (!%p2265_p12)
}
  0x3c   :  { %s2269_s18 = scalar_lea.vmem %s67_s29, 4096  ;;  %p2274_p0 = scmp.lt.s32.totalorder %s67_s29, %s67_s29 }
  0x3d   :  { %p2270_p13 = scmp.ne.s32.totalorder %s67_s29, %s2269_s18  ;;  %p2275_p1 = scmp.lt.s32.totalorder %s2269_s18, %s2269_s18 }
  0x3f   :  { %p2276_p2 = por %p2275_p1, %p2274_p0 }
  0x41   :  { %p2277_p3 = pnand %p2276_p2, %p2270_p13 }
  0x43   :  { %2280 = shalt.err (!%p2277_p3)
}
  0x44   :  { %72 = dma.hbm_to_vmem [thread:$0]  %s2452_s7, 4096, %s67_s29, [#allocation8], %s2291_s3, %s2291_s3, %s2292_s10  }
  0x45   :  { %2281 = dma.done.wait [#allocation3], 6272  }
  0x46   :  { %2282 = vsyncadd [#allocation3], 4294961024 }
  0x47   :  { %2283 = dma.done.wait [#allocation5], 10240  }
  0x48   :  { %2284 = vsyncadd [#allocation5], 4294957056 }
  0x49   :  { %2285 = dma.done.wait [#allocation8], 4096  }
  0x4a   :  { %2286 = vsyncadd [#allocation8], 4294963200  ;;  %v1985_v0 = vld [vmem:[#allocation2 + $0x40] sm:$0xff]   ;;  %v1989_v4 = vld [vmem:[#allocation2 + $0x48] sm:$0xff]   ;;  %v2297_v43 = vmov 0.0   ;;  %vm2298_vm0 = vmmov 0  }
  0x4b   :  { %v1986_v1 = vld [vmem:[#allocation2] sm:$0xff]   ;;  %1854 = vmatprep.subr.bf16.mxu0 %v1985_v0  ;;  %v1990_v5 = vld [vmem:[#allocation2 + $0x8] sm:$0xff]   ;;  %v1993_v8 = vld [vmem:[#allocation2 + $0x50] sm:$0xff]   ;;  %vm515_vm1 = vcmask 130048  }
  0x4c   :  { %v1987_v2 = vld [vmem:[#allocation2 + $0xc0] sm:$0xff]   ;;  %1855 = vmatpush3.bf16.msra.mxu0 %v1986_v1  ;;  %v1991_v6 = vld [vmem:[#allocation2 + $0xc8] sm:$0xff]   ;;  %v1994_v9 = vld [vmem:[#allocation2 + $0x10] sm:$0xff]  }
  0x4d   :  { %v1988_v3 = vld [vmem:[#allocation2 + $0x80] sm:$0xff]   ;;  %1876 = vmatprep.subr.bf16.mxu1 %v1987_v2  ;;  %1856 = vmatprep.subr.bf16.mxu0 %v1989_v4  ;;  %v1992_v7 = vld [vmem:[#allocation2 + $0x88] sm:$0xff]   ;;  %v1995_v10 = vld [vmem:[#allocation2 + $0xd0] sm:$0xff]  }
  0x4e   :  { %1877 = vmatpush3.bf16.msra.mxu1 %v1988_v3  ;;  %v1996_v11 = vld [vmem:[#allocation2 + $0x90] sm:$0xff]   ;;  %v1997_v12 = vld [vmem:[#allocation2 + $0x58] sm:$0xff]   ;;  %v2001_v16 = vld [vmem:[#allocation2 + $0x60] sm:$0xff]  }
  0x4f   :  { %1878 = vmatprep.subr.bf16.mxu1 %v1991_v6  ;;  %v1998_v13 = vld [vmem:[#allocation2 + $0x18] sm:$0xff]   ;;  %v2002_v17 = vld [vmem:[#allocation2 + $0x20] sm:$0xff]   ;;  %v2005_v20 = vld [vmem:[#allocation2 + $0x68] sm:$0xff]  }
  0x50   :  { %1857 = vmatpush3.bf16.msra.mxu0 %v1990_v5  ;;  %v1999_v14 = vld [vmem:[#allocation2 + $0xd8] sm:$0xff]   ;;  %v2003_v18 = vld [vmem:[#allocation2 + $0xe0] sm:$0xff]   ;;  %v2006_v21 = vld [vmem:[#allocation2 + $0x28] sm:$0xff]  }
  0x51   :  { %1858 = vmatprep.subr.bf16.mxu0 %v1993_v8  ;;  %v2000_v15 = vld [vmem:[#allocation2 + $0x98] sm:$0xff]   ;;  %v2004_v19 = vld [vmem:[#allocation2 + $0xa0] sm:$0xff]   ;;  %v2007_v22 = vld [vmem:[#allocation2 + $0xe8] sm:$0xff]  }
  0x52   :  { %1879 = vmatpush3.bf16.msra.mxu1 %v1992_v7  ;;  %v2008_v23 = vld [vmem:[#allocation2 + $0xa8] sm:$0xff]   ;;  %v2009_v24 = vld [vmem:[#allocation2 + $0x70] sm:$0xff]   ;;  %v2013_v28 = vld [vmem:[#allocation2 + $0x78] sm:$0xff]  }
  0x53   :  { %1880 = vmatprep.subr.bf16.mxu1 %v1995_v10  ;;  %v2010_v25 = vld [vmem:[#allocation2 + $0x30] sm:$0xff]   ;;  %v2014_v29 = vld [vmem:[#allocation2 + $0x38] sm:$0xff]   ;;  %v88_v31 = vld [vmem:[%s2445_s0] sm:$0xff] }
  0x54   :  { %1859 = vmatpush3.bf16.msra.mxu0 %v1994_v9  ;;  %v2011_v26 = vld [vmem:[#allocation2 + $0xf0] sm:$0xff]   ;;  %v2015_v30 = vld [vmem:[#allocation2 + $0xf8] sm:$0xff]   ;;  %v1684_v32 = vcombine.low %v88_v31, %v88_v31  ;;  %v1685_v33 = vcombine.high %v88_v31, %v88_v31  ;;  %v2019_v35 = vld [vmem:[#allocation2 + $0x140] sm:$0xff]  }
  0x55   :  { %1860 = vmatprep.subr.bf16.mxu0 %v1997_v12  ;;  %v2012_v27 = vld [vmem:[#allocation2 + $0xb0] sm:$0xff]   ;;  %v2018_v34 = vld [vmem:[#allocation2 + $0xb8] sm:$0xff]   ;;  %v89_v36 = vld [vmem:[%s2445_s0 + $0x8] sm:$0xff]  ;;  %v2299_v12 = vmov 0  }
  0x56   :  { %1881 = vmatpush3.bf16.msra.mxu1 %v1996_v11  ;;  %551 = vmatprep.mubr.bf16.mxu0 %v1685_v33  ;;  %v1686_v37 = vcombine.low %v89_v36, %v89_v36  ;;  %v1687_v38 = vcombine.high %v89_v36, %v89_v36  ;;  %v2022_v39 = vld [vmem:[#allocation2 + $0x100] sm:$0xff]   ;;  %v2023_v40 = vld [vmem:[#allocation2 + $0x148] sm:$0xff]   ;;  %v2025_v42 = vld [vmem:[#allocation2 + $0x150] sm:$0xff]  }
  0x57   :  { %1882 = vmatprep.subr.bf16.mxu1 %v1999_v14  ;;  %v2024_v41 = vld [vmem:[#allocation2 + $0x108] sm:$0xff]   ;;  %v2026_v44 = vld [vmem:[#allocation2 + $0x110] sm:$0xff]   ;;  %v2027_v45 = vld [vmem:[#allocation2 + $0x158] sm:$0xff]  }
  0x58   :  { %1861 = vmatpush3.bf16.msra.mxu0 %v1998_v13  ;;  %591 = vmatprep.mubr.bf16.mxu1 %v1687_v38  ;;  %v2028_v46 = vld [vmem:[#allocation2 + $0x118] sm:$0xff]   ;;  %v2029_v47 = vld [vmem:[#allocation2 + $0x160] sm:$0xff]   ;;  %v2031_v49 = vld [vmem:[#allocation2 + $0x168] sm:$0xff]  }
  0x59   :  { %1862 = vmatprep.subr.bf16.mxu0 %v2001_v16  ;;  %v2030_v48 = vld [vmem:[#allocation2 + $0x120] sm:$0xff]   ;;  %v90_v51 = vld [vmem:[%s2445_s0 + $0x10] sm:$0xff]  ;;  %v2032_v52 = vld [vmem:[#allocation2 + $0x128] sm:$0xff]  }
  0x5a   :  { %1883 = vmatpush3.bf16.msra.mxu1 %v2000_v15  ;;  %v2037_v50 = vld [vmem:[#allocation2 + $0x180] sm:$0xff]   ;;  %v1689_v53 = vcombine.high %v90_v51, %v90_v51  ;;  %v2040_v54 = vld [vmem:[%s2445_s0 + $0x18] ss:$0 sps:$4 sm:$0xff]   ;;  %v2033_v55 = vld [vmem:[#allocation2 + $0x170] sm:$0xff]   ;;  %v1688_v59 = vcombine.low %v90_v51, %v90_v51 }
  0x5b   :  { %1884 = vmatprep.subr.bf16.mxu1 %v2003_v18  ;;  %v2034_v56 = vld [vmem:[#allocation2 + $0x130] sm:$0xff]   ;;  %v2035_v57 = vld [vmem:[#allocation2 + $0x178] sm:$0xff]  }
  0x5c   :  { %1863 = vmatpush3.bf16.msra.mxu0 %v2002_v17  ;;  %v2036_v58 = vld [vmem:[#allocation2 + $0x138] sm:$0xff]   ;;  %v2041_v60 = vld [vmem:[#allocation4] ss:$8 sps:$4 sm:$0xff]   ;;  %v2043_v61 = vld [vmem:[#allocation4 + $0x4] ss:$8 sps:$4 sm:$0xff]  }
  0x5d   :  { %1864 = vmatprep.subr.bf16.mxu0 %v2005_v20  ;;  %v2046_v62 = vld [vmem:[#allocation4 + $0x14] ss:$8 sps:$4 sm:$0xff]   ;;  %v2044_v63 = vld [vmem:[#allocation4 + $0x10] ss:$8 sps:$4 sm:$0xff]   ;;  %v2049_v0 = vld [vmem:[#allocation4 + $0x24] ss:$8 sps:$4 sm:$0xff]  }
  0x5e   :  { %1885 = vmatpush3.bf16.msra.mxu1 %v2004_v19  ;;  %v2047_v1 = vld [vmem:[#allocation4 + $0x20] ss:$8 sps:$4 sm:$0xff]   ;;  %v2052_v2 = vld [vmem:[#allocation4 + $0x34] ss:$8 sps:$4 sm:$0xff]   ;;  %v2050_v3 = vld [vmem:[#allocation4 + $0x30] ss:$8 sps:$4 sm:$0xff]  }
  0x5f   :  { %1886 = vmatprep.subr.bf16.mxu1 %v2007_v22  ;;  %v2055_v4 = vld [vmem:[#allocation4 + $0x44] ss:$8 sps:$4 sm:$0xff]   ;;  %v2053_v5 = vld [vmem:[#allocation4 + $0x40] ss:$8 sps:$4 sm:$0xff]   ;;  %v2058_v6 = vld [vmem:[#allocation4 + $0x54] ss:$8 sps:$4 sm:$0xff]  }
  0x60   :  { %1865 = vmatpush3.bf16.msra.mxu0 %v2006_v21  ;;  %v2056_v7 = vld [vmem:[#allocation4 + $0x50] ss:$8 sps:$4 sm:$0xff]   ;;  %v2061_v8 = vld [vmem:[#allocation4 + $0x64] ss:$8 sps:$4 sm:$0xff]   ;;  %v2059_v9 = vld [vmem:[#allocation4 + $0x60] ss:$8 sps:$4 sm:$0xff]  }
  0x61   :  { %1866 = vmatprep.subr.bf16.mxu0 %v2009_v24  ;;  %v2064_v10 = vld [vmem:[#allocation4 + $0x74] ss:$8 sps:$4 sm:$0xff]   ;;  %v2062_v11 = vld [vmem:[#allocation4 + $0x70] ss:$8 sps:$4 sm:$0xff]  }
  0x62   :  { %1887 = vmatpush3.bf16.msra.mxu1 %v2008_v23  ;;  %v2065_v13 = vld [vmem:[#allocation6] ss:$16 sps:$4 sm:$0xff]   ;;  %v2067_v14 = vld [vmem:[#allocation6 + $0x4] ss:$16 sps:$4 sm:$0xff]   ;;  %v2070_v15 = vld [vmem:[#allocation6 + $0xc] ss:$16 sps:$4 sm:$0xff]  }
  0x63   :  { %1888 = vmatprep.subr.bf16.mxu1 %v2011_v26  ;;  %v2073_v16 = vld [vmem:[#allocation6 + $0x24] ss:$16 sps:$4 sm:$0xff]   ;;  %v2071_v17 = vld [vmem:[#allocation6 + $0x20] ss:$16 sps:$4 sm:$0xff]  }
  0x64   :  { %1867 = vmatpush3.bf16.msra.mxu0 %v2010_v25  ;;  %v2079_v18 = vld [vmem:[#allocation6 + $0x44] ss:$16 sps:$4 sm:$0xff]   ;;  %v2077_v19 = vld [vmem:[#allocation6 + $0x40] ss:$16 sps:$4 sm:$0xff]  }
  0x65   :  { %1868 = vmatprep.subr.bf16.mxu0 %v2013_v28  ;;  %v2085_v20 = vld [vmem:[#allocation6 + $0x64] ss:$16 sps:$4 sm:$0xff]   ;;  %v2083_v21 = vld [vmem:[#allocation6 + $0x60] ss:$16 sps:$4 sm:$0xff]  }
  0x66   :  { %1889 = vmatpush3.bf16.msra.mxu1 %v2012_v27  ;;  %v2091_v22 = vld [vmem:[#allocation6 + $0x84] ss:$16 sps:$4 sm:$0xff]   ;;  %v2089_v23 = vld [vmem:[#allocation6 + $0x80] ss:$16 sps:$4 sm:$0xff]  }
  0x67   :  { %1890 = vmatprep.subr.bf16.mxu1 %v2015_v30  ;;  %v2097_v24 = vld [vmem:[#allocation6 + $0xa4] ss:$16 sps:$4 sm:$0xff]   ;;  %v2095_v25 = vld [vmem:[#allocation6 + $0xa0] ss:$16 sps:$4 sm:$0xff]  }
  0x68   :  { %1869 = vmatpush3.bf16.msra.mxu0 %v2014_v29  ;;  %v2103_v26 = vld [vmem:[#allocation6 + $0xc4] ss:$16 sps:$4 sm:$0xff]   ;;  %v2101_v27 = vld [vmem:[#allocation6 + $0xc0] ss:$16 sps:$4 sm:$0xff]  }
  0x69   :  { %1898 = vmatprep.subr.bf16.mxu0 %v2019_v35  ;;  %v2109_v28 = vld [vmem:[#allocation6 + $0xe4] ss:$16 sps:$4 sm:$0xff]   ;;  %v2107_v29 = vld [vmem:[#allocation6 + $0xe0] ss:$16 sps:$4 sm:$0xff]  }
  0x6a   :  { %1891 = vmatpush3.bf16.msra.mxu1 %v2018_v34  ;;  %v2115_v30 = vld [vmem:[#allocation6 + $0x104] ss:$16 sps:$4 sm:$0xff]   ;;  %v2113_v31 = vld [vmem:[#allocation6 + $0x100] ss:$16 sps:$4 sm:$0xff]  }
  0x6b   :  { %552 = vmatmul.mubr.bf16.vlgmr.msra.gmra.mrb[0].mxu0 %v1684_v32  ;;  %1966 = vmatprep.subr.bf16.mxu1 %v2297_v43  ;;  %v2121_v32 = vld [vmem:[#allocation6 + $0x124] ss:$16 sps:$4 sm:$0xff]   ;;  %v2119_v33 = vld [vmem:[#allocation6 + $0x120] ss:$16 sps:$4 sm:$0xff]  }
  0x6c   :  { %1899 = vmatpush3.bf16.msra.mxu0 %v2022_v39  ;;  %631 = vmatprep.mubr.bf16.mxu0 %v1689_v53  ;;  %v2127_v34 = vld [vmem:[#allocation6 + $0x144] ss:$16 sps:$4 sm:$0xff]   ;;  %v2125_v35 = vld [vmem:[#allocation6 + $0x140] ss:$16 sps:$4 sm:$0xff]  }
  0x6d   :  { %592 = vmatmul.mubr.bf16.vlgmr.msra.gmra.mrb[0].mxu1 %v1686_v37  ;;  %1900 = vmatprep.subr.bf16.mxu0 %v2023_v40  ;;  %v2133_v36 = vld [vmem:[#allocation6 + $0x164] ss:$16 sps:$4 sm:$0xff]   ;;  %v2131_v37 = vld [vmem:[#allocation6 + $0x160] ss:$16 sps:$4 sm:$0xff]  }
  0x6e   :  { %1968 = vmatprep.mubr.msk.bf16.mxu1 %vm2298_vm0, %v2297_v43  ;;  %1967 = vmatpush3.bf16.msra.mxu1 %v2037_v50  ;;  %v2139_v38 = vld [vmem:[#allocation6 + $0x184] ss:$16 sps:$4 sm:$0xff]   ;;  %v2137_v39 = vld [vmem:[#allocation6 + $0x180] ss:$16 sps:$4 sm:$0xff]   ;;  %v1683_v43 = vld [vmem:[%s2447_s2] ss:$0 sm:$0xff] }
  0x6f   :  { %789 = vmatprep.subr.bf16.mxu1 %v2043_v61  ;;  %v2145_v40 = vld [vmem:[#allocation6 + $0x1a4] ss:$16 sps:$4 sm:$0xff]  }
  0x70   :  { %1901 = vmatpush3.bf16.msra.mxu0 %v2024_v41  ;;  %v2143_v41 = vld [vmem:[#allocation6 + $0x1a0] ss:$16 sps:$4 sm:$0xff]  }
  0x71   :  { %1902 = vmatprep.subr.bf16.mxu0 %v2025_v42 }
  0x74   :  { %1903 = vmatpush3.bf16.msra.mxu0 %v2026_v44 }
  0x75   :  { %1904 = vmatprep.subr.bf16.mxu0 %v2027_v45  ;;  %1969 = vmatmul.mubr.msk.bf16.vlgmr.msra.gmra.mrb[4].mxu1 %vm515_vm1, %v2040_v54 }
  0x76   :  { %790 = vmatpush1.bf16.msra.mxu1 %v2041_v60  ;;  %821 = vmatprep.mubr.bf16.mxu1 %v2299_v12  ;;  %v2092_v12 = vld [vmem:[#allocation6 + $0x88] ss:$16 sps:$4 sm:$0xff]  }
  0x77   :  { %791 = vmatprep.subr.bf16.mxu1 %v2046_v62 }
  0x78   :  { %1905 = vmatpush3.bf16.msra.mxu0 %v2028_v46 }
  0x79   :  { %1906 = vmatprep.subr.bf16.mxu0 %v2029_v47 }
  0x7a   :  { %792 = vmatpush1.bf16.msra.mxu1 %v2044_v63 }
  0x7b   :  { %793 = vmatprep.subr.bf16.mxu1 %v2049_v0 }
  0x7c   :  { %1907 = vmatpush3.bf16.msra.mxu0 %v2030_v48 }
  0x7d   :  { %1908 = vmatprep.subr.bf16.mxu0 %v2031_v49 }
  0x7e   :  { %794 = vmatpush1.bf16.msra.mxu1 %v2047_v1 }
  0x7f   :  { %795 = vmatprep.subr.bf16.mxu1 %v2052_v2 }
  0x80   :  { %1909 = vmatpush3.bf16.msra.mxu0 %v2032_v52 }
  0x81   :  { %1910 = vmatprep.subr.bf16.mxu0 %v2033_v55 }
  0x82   :  { %796 = vmatpush1.bf16.msra.mxu1 %v2050_v3  ;;  %v2068_v3 = vld [vmem:[#allocation6 + $0x8] ss:$16 sps:$4 sm:$0xff]  }
  0x83   :  { %797 = vmatprep.subr.bf16.mxu1 %v2055_v4 }
  0x84   :  { %1911 = vmatpush3.bf16.msra.mxu0 %v2034_v56 }
  0x85   :  { %1912 = vmatprep.subr.bf16.mxu0 %v2035_v57 }
  0x86   :  { %798 = vmatpush1.bf16.msra.mxu1 %v2053_v5  ;;  %v2076_v5 = vld [vmem:[#allocation6 + $0x2c] ss:$16 sps:$4 sm:$0xff]  }
  0x87   :  { %799 = vmatprep.subr.bf16.mxu1 %v2058_v6  ;;  %v2074_v6 = vld [vmem:[#allocation6 + $0x28] ss:$16 sps:$4 sm:$0xff]  }
  0x88   :  { %1913 = vmatpush3.bf16.msra.mxu0 %v2036_v58 }
  0x89   :  { %1240 = vmatprep.subr.bf16.mxu0 %v2067_v14  ;;  %v2098_v14 = vld [vmem:[#allocation6 + $0xa8] ss:$16 sps:$4 sm:$0xff]  }
  0x8a   :  { %800 = vmatpush1.bf16.msra.mxu1 %v2056_v7  ;;  %v2082_v7 = vld [vmem:[#allocation6 + $0x4c] ss:$16 sps:$4 sm:$0xff]  }
  0x8b   :  { %632 = vmatmul.mubr.bf16.vlgmr.msra.gmra.mrb[4].mxu0 %v1688_v59  ;;  %801 = vmatprep.subr.bf16.mxu1 %v2061_v8  ;;  %v2080_v8 = vld [vmem:[#allocation6 + $0x48] ss:$16 sps:$4 sm:$0xff]  }
  0x8c   :  { %1241 = vmatpush1.bf16.msra.mxu0 %v2065_v13  ;;  %v2100_v13 = vld [vmem:[#allocation6 + $0xac] ss:$16 sps:$4 sm:$0xff]  }
  0x8d   :  { %1242 = vmatprep.subr.bf16.mxu0 %v2073_v16  ;;  %v2104_v16 = vld [vmem:[#allocation6 + $0xc8] ss:$16 sps:$4 sm:$0xff]  }
  0x8e   :  { %802 = vmatpush1.bf16.msra.mxu1 %v2059_v9  ;;  %v2088_v9 = vld [vmem:[#allocation6 + $0x6c] ss:$16 sps:$4 sm:$0xff]  }
  0x8f   :  { %803 = vmatprep.subr.bf16.mxu1 %v2064_v10  ;;  %v2086_v10 = vld [vmem:[#allocation6 + $0x68] ss:$16 sps:$4 sm:$0xff]  }
  0x90   :  { %1243 = vmatpush1.bf16.msra.mxu0 %v2071_v17  ;;  %v2112_v17 = vld [vmem:[#allocation6 + $0xec] ss:$16 sps:$4 sm:$0xff]  }
  0x91   :  { %1244 = vmatprep.subr.bf16.mxu0 %v2079_v18  ;;  %v2110_v18 = vld [vmem:[#allocation6 + $0xe8] ss:$16 sps:$4 sm:$0xff]  }
  0x92   :  { %804 = vmatpush1.bf16.msra.mxu1 %v2062_v11  ;;  %v2094_v11 = vld [vmem:[#allocation6 + $0x8c] ss:$16 sps:$4 sm:$0xff]  }
  0x93   :  { %1281 = vmatprep.subr.bf16.mxu1 %v2070_v15  ;;  %v2106_v15 = vld [vmem:[#allocation6 + $0xcc] ss:$16 sps:$4 sm:$0xff]  }
  0x94   :  { %1245 = vmatpush1.bf16.msra.mxu0 %v2077_v19  ;;  %v2118_v19 = vld [vmem:[#allocation6 + $0x10c] ss:$16 sps:$4 sm:$0xff]  }
  0x95   :  { %1246 = vmatprep.subr.bf16.mxu0 %v2085_v20  ;;  %v2116_v20 = vld [vmem:[#allocation6 + $0x108] ss:$16 sps:$4 sm:$0xff]  }
  0x98   :  { %1247 = vmatpush1.bf16.msra.mxu0 %v2083_v21  ;;  %v2124_v21 = vld [vmem:[#allocation6 + $0x12c] ss:$16 sps:$4 sm:$0xff]  }
  0x99   :  { %1248 = vmatprep.subr.bf16.mxu0 %v2091_v22  ;;  %v2122_v22 = vld [vmem:[#allocation6 + $0x128] ss:$16 sps:$4 sm:$0xff]  }
  0x9c   :  { %1249 = vmatpush1.bf16.msra.mxu0 %v2089_v23  ;;  %v2130_v23 = vld [vmem:[#allocation6 + $0x14c] ss:$16 sps:$4 sm:$0xff]  }
  0x9d   :  { %1250 = vmatprep.subr.bf16.mxu0 %v2097_v24  ;;  %v2128_v24 = vld [vmem:[#allocation6 + $0x148] ss:$16 sps:$4 sm:$0xff]  }
  0xa0   :  { %1251 = vmatpush1.bf16.msra.mxu0 %v2095_v25  ;;  %v2136_v25 = vld [vmem:[#allocation6 + $0x16c] ss:$16 sps:$4 sm:$0xff]  }
  0xa1   :  { %1252 = vmatprep.subr.bf16.mxu0 %v2103_v26  ;;  %v2134_v26 = vld [vmem:[#allocation6 + $0x168] ss:$16 sps:$4 sm:$0xff]  }
  0xa4   :  { %1253 = vmatpush1.bf16.msra.mxu0 %v2101_v27  ;;  %v2142_v27 = vld [vmem:[#allocation6 + $0x18c] ss:$16 sps:$4 sm:$0xff]  }
  0xa5   :  { %1254 = vmatprep.subr.bf16.mxu0 %v2109_v28  ;;  %v2140_v28 = vld [vmem:[#allocation6 + $0x188] ss:$16 sps:$4 sm:$0xff]  }
  0xa8   :  { %1255 = vmatpush1.bf16.msra.mxu0 %v2107_v29  ;;  %v2148_v29 = vld [vmem:[#allocation6 + $0x1ac] ss:$16 sps:$4 sm:$0xff]  }
  0xa9   :  { %1256 = vmatprep.subr.bf16.mxu0 %v2115_v30  ;;  %v2146_v30 = vld [vmem:[#allocation6 + $0x1a8] ss:$16 sps:$4 sm:$0xff]  }
  0xac   :  { %1257 = vmatpush1.bf16.msra.mxu0 %v2113_v31  ;;  %v2151_v31 = vld [vmem:[#allocation6 + $0x1c4] ss:$16 sps:$4 sm:$0xff]  }
  0xad   :  { %1258 = vmatprep.subr.bf16.mxu0 %v2121_v32  ;;  %v2154_v32 = vld [vmem:[#allocation6 + $0x1cc] ss:$16 sps:$4 sm:$0xff]  }
  0xb0   :  { %1259 = vmatpush1.bf16.msra.mxu0 %v2119_v33  ;;  %v2149_v33 = vld [vmem:[#allocation6 + $0x1c0] ss:$16 sps:$4 sm:$0xff]  }
  0xb1   :  { %1260 = vmatprep.subr.bf16.mxu0 %v2127_v34  ;;  %v2152_v34 = vld [vmem:[#allocation6 + $0x1c8] ss:$16 sps:$4 sm:$0xff]  }
  0xb4   :  { %1261 = vmatpush1.bf16.msra.mxu0 %v2125_v35  ;;  %v2157_v35 = vld [vmem:[#allocation6 + $0x1e4] ss:$16 sps:$4 sm:$0xff]  }
  0xb5   :  { %1262 = vmatprep.subr.bf16.mxu0 %v2133_v36  ;;  %v2160_v36 = vld [vmem:[#allocation6 + $0x1ec] ss:$16 sps:$4 sm:$0xff]  }
  0xb8   :  { %1263 = vmatpush1.bf16.msra.mxu0 %v2131_v37  ;;  %v2155_v37 = vld [vmem:[#allocation6 + $0x1e0] ss:$16 sps:$4 sm:$0xff]  }
  0xb9   :  { %1264 = vmatprep.subr.bf16.mxu0 %v2139_v38  ;;  %v2158_v38 = vld [vmem:[#allocation6 + $0x1e8] ss:$16 sps:$4 sm:$0xff]  }
  0xbc   :  { %1265 = vmatpush1.bf16.msra.mxu0 %v2137_v39  ;;  %v2161_v39 = vld [vmem:[#allocation7 + $0x40] sm:$0xff]  }
  0xbd   :  { %1266 = vmatprep.subr.bf16.mxu0 %v2145_v40  ;;  %v2162_v40 = vld [vmem:[#allocation7 + $0xc0] sm:$0xff]  }
  0xc0   :  { %1267 = vmatpush1.bf16.msra.mxu0 %v2143_v41  ;;  %v699_v41 = vlaneseq }
  0xc1   :  { %1268 = vmatprep.subr.bf16.mxu0 %v2151_v31 }
  0xc4   :  { %1269 = vmatpush1.bf16.msra.mxu0 %v2149_v33 }
  0xc5   :  { %1270 = vmatprep.subr.bf16.mxu0 %v2157_v35 }
  0xc8   :  { %1271 = vmatpush1.bf16.msra.mxu0 %v2155_v37 }
  0xc9   :  { %1922 = vmatprep.subr.bf16.mxu0 %v2161_v39 }
 0x13e   :  { %v1870_v42 = vpop.f32.mrb[0].mxu0 }
 0x13f   :  { %v1871_v44 = vpop.f32.mrb[1].mxu0 }
 0x140   :  { %v1872_v45 = vadd.f32 %v1871_v44, %v1870_v42  ;;  %v1873_v46 = vpop.f32.mrb[2].mxu0  ;;  %v1892_v47 = vpop.f32.mrb[0].mxu1  ;;  %v2419_v42 = vshrl.u32 %v699_v41, 7  ;;  %v697_v44 = vld [vmem:[%s2449_s4] sm:$0x3] }
 0x141   :  { %v1874_v48 = vpop.f32.mrb[3].mxu0  ;;  %v1893_v49 = vpop.f32.mrb[1].mxu1 }
 0x142   :  { %v554_v50 = vadd.f32 %v1872_v45, %v1683_v43  ;;  %v1894_v51 = vadd.f32 %v1893_v49, %v1892_v47  ;;  %v1895_v52 = vpop.f32.mrb[2].mxu1  ;;  %v701_v43 = vsub.s32 0, %v2419_v42  ;;  %v705_v45 = vsub.s32 1, %v2419_v42 }
 0x143   :  { %v1896_v53 = vpop.f32.mrb[3].mxu1 }
 0x144   :  { %v594_v54 = vadd.f32 %v1894_v51, %v554_v50  ;;  %v702_v46 = vrot.slane %v697_v44, %v701_v43  ;;  %v706_v47 = vrot.slane %v697_v44, %v705_v45 }
 0x148   :  { %v673_v55 = vpop.f32.mrb[4].mxu1 }
 0x149   :  { %v1970_v56 = vpop.f32.mrb[5].mxu1 }
 0x14a   :  { %v676_v57 = vpop.f32.mrb[6].mxu1 }
 0x14b   :  { %v1971_v58 = vpop.f32.mrb[7].mxu1  ;;  %v2163_v57 = vld [vmem:[#allocation7] sm:$0xff]  }
 0x14c   :  { %v2164_v58 = vld [vmem:[#allocation7 + $0x80] sm:$0xff]  }
 0x15e   :  { %v1914_v59 = vpop.f32.mrb[4].mxu0 }
 0x15f   :  { %v1915_v60 = vpop.f32.mrb[5].mxu0 }
 0x160   :  { %v1916_v61 = vadd.f32 %v1915_v60, %v1914_v59  ;;  %v1917_v62 = vpop.f32.mrb[6].mxu0  ;;  %v2165_v60 = vld [vmem:[#allocation7 + $0x48] sm:$0xff]  }
 0x161   :  { %v1918_v63 = vpop.f32.mrb[7].mxu0  ;;  %v2167_v62 = vld [vmem:[#allocation7 + $0x8] sm:$0xff]  }
 0x162   :  { %v634_v0 = vadd.f32 %v1916_v61, %v594_v54  ;;  %v2166_v61 = vld [vmem:[#allocation7 + $0xc8] sm:$0xff]  }
 0x163   :  { %v2168_v63 = vld [vmem:[#allocation7 + $0x88] sm:$0xff]  }
 0x164   :  { %v674_v1 = vadd.f32 %v673_v55, %v634_v0  ;;  %v2169_v0 = vld [vmem:[#allocation7 + $0x50] sm:$0xff]  }
 0x166   :  { %v679_v2 = vmax.f32 %v674_v1, 0.0  ;;  %v2170_v1 = vld [vmem:[#allocation7 + $0xd0] sm:$0xff]  }
 0x168   :  { %v680_v4 = vpack.c.bf16 %v679_v2, %v679_v2  ;;  %v2171_v2 = vld [vmem:[#allocation7 + $0x10] sm:$0xff]  }
 0x16a   :  { %822 = vmatmul.mubr.bf16.vlgmr.msra.gmra.mrb[8].mxu1 %v680_v4  ;;  %v2173_v4 = vld [vmem:[#allocation7 + $0x58] sm:$0xff]  }
 0x16b   :  { %1282 = vmatpush1.bf16.msra.mxu1 %v2068_v3  ;;  %v2172_v3 = vld [vmem:[#allocation7 + $0x90] sm:$0xff]  }
 0x16c   :  { %1283 = vmatprep.subr.bf16.mxu1 %v2076_v5  ;;  %v2174_v5 = vld [vmem:[#allocation7 + $0xd8] sm:$0xff]  }
 0x16f   :  { %1284 = vmatpush1.bf16.msra.mxu1 %v2074_v6  ;;  %v2175_v6 = vld [vmem:[#allocation7 + $0x18] sm:$0xff]  }
 0x170   :  { %1285 = vmatprep.subr.bf16.mxu1 %v2082_v7  ;;  %v2176_v7 = vld [vmem:[#allocation7 + $0x98] sm:$0xff]  }
 0x173   :  { %1286 = vmatpush1.bf16.msra.mxu1 %v2080_v8  ;;  %v2177_v8 = vld [vmem:[#allocation7 + $0x60] sm:$0xff]  }
 0x174   :  { %1287 = vmatprep.subr.bf16.mxu1 %v2088_v9  ;;  %v2178_v9 = vld [vmem:[#allocation7 + $0xe0] sm:$0xff]  }
 0x177   :  { %1288 = vmatpush1.bf16.msra.mxu1 %v2086_v10  ;;  %v2179_v10 = vld [vmem:[#allocation7 + $0x20] sm:$0xff]  }
 0x178   :  { %1289 = vmatprep.subr.bf16.mxu1 %v2094_v11  ;;  %v2180_v11 = vld [vmem:[#allocation7 + $0xa0] sm:$0xff]  }
 0x17b   :  { %1290 = vmatpush1.bf16.msra.mxu1 %v2092_v12  ;;  %v2181_v12 = vld [vmem:[#allocation7 + $0x68] sm:$0xff]  }
 0x17c   :  { %1291 = vmatprep.subr.bf16.mxu1 %v2100_v13  ;;  %v2182_v13 = vld [vmem:[#allocation7 + $0xe8] sm:$0xff]  }
 0x17f   :  { %1292 = vmatpush1.bf16.msra.mxu1 %v2098_v14  ;;  %v2183_v14 = vld [vmem:[#allocation7 + $0x28] sm:$0xff]  }
 0x180   :  { %1293 = vmatprep.subr.bf16.mxu1 %v2106_v15  ;;  %v2184_v15 = vld [vmem:[#allocation7 + $0xa8] sm:$0xff]  }
 0x183   :  { %1294 = vmatpush1.bf16.msra.mxu1 %v2104_v16  ;;  %v2185_v16 = vld [vmem:[#allocation7 + $0x70] sm:$0xff]  }
 0x184   :  { %1295 = vmatprep.subr.bf16.mxu1 %v2112_v17  ;;  %v2186_v17 = vld [vmem:[#allocation7 + $0xf0] sm:$0xff]  }
 0x187   :  { %1296 = vmatpush1.bf16.msra.mxu1 %v2110_v18  ;;  %v2187_v18 = vld [vmem:[#allocation7 + $0x30] sm:$0xff]  }
 0x188   :  { %1297 = vmatprep.subr.bf16.mxu1 %v2118_v19  ;;  %v2188_v19 = vld [vmem:[#allocation7 + $0xb0] sm:$0xff]  }
 0x18b   :  { %1298 = vmatpush1.bf16.msra.mxu1 %v2116_v20  ;;  %v2189_v20 = vld [vmem:[#allocation7 + $0x78] sm:$0xff]  }
 0x18c   :  { %1299 = vmatprep.subr.bf16.mxu1 %v2124_v21  ;;  %v2190_v21 = vld [vmem:[#allocation7 + $0xf8] sm:$0xff]  }
 0x18f   :  { %1300 = vmatpush1.bf16.msra.mxu1 %v2122_v22  ;;  %v2191_v22 = vld [vmem:[#allocation7 + $0x38] sm:$0xff]  }
 0x190   :  { %1301 = vmatprep.subr.bf16.mxu1 %v2130_v23  ;;  %v2192_v23 = vld [vmem:[#allocation7 + $0xb8] sm:$0xff]  }
 0x193   :  { %1302 = vmatpush1.bf16.msra.mxu1 %v2128_v24  ;;  %v910_v24 = vsub.s32 2, %v2419_v42 }
 0x194   :  { %1303 = vmatprep.subr.bf16.mxu1 %v2136_v25  ;;  %v898_v25 = vld [vmem:[%s2451_s6] sm:$0xf] }
 0x197   :  { %1304 = vmatpush1.bf16.msra.mxu1 %v2134_v26  ;;  %v914_v26 = vsub.s32 3, %v2419_v42 }
 0x198   :  { %1305 = vmatprep.subr.bf16.mxu1 %v2142_v27  ;;  %v903_v27 = vrot.slane %v898_v25, %v701_v43 }
 0x19b   :  { %1306 = vmatpush1.bf16.msra.mxu1 %v2140_v28  ;;  %v911_v28 = vrot.slane %v898_v25, %v910_v24 }
 0x19c   :  { %1307 = vmatprep.subr.bf16.mxu1 %v2148_v29  ;;  %v907_v29 = vrot.slane %v898_v25, %v705_v45 }
 0x19f   :  { %1308 = vmatpush1.bf16.msra.mxu1 %v2146_v30  ;;  %v915_v30 = vrot.slane %v898_v25, %v914_v26 }
 0x1a0   :  { %1309 = vmatprep.subr.bf16.mxu1 %v2154_v32 }
 0x1a3   :  { %1310 = vmatpush1.bf16.msra.mxu1 %v2152_v34 }
 0x1a4   :  { %1311 = vmatprep.subr.bf16.mxu1 %v2160_v36 }
 0x1a7   :  { %1312 = vmatpush1.bf16.msra.mxu1 %v2158_v38 }
 0x1a8   :  { %1944 = vmatprep.subr.bf16.mxu1 %v2162_v40 }
 0x23d   :  { %v823_v48 = vpop.f32.mrb[8].mxu1 }
 0x23e   :  { %v824_v49 = vadd.f32 %v823_v48, %v702_v46  ;;  %v825_v50 = vpop.f32.mrb[9].mxu1 }
 0x23f   :  { %v826_v51 = vadd.f32 %v825_v50, %v706_v47  ;;  %v827_v52 = vpop.f32.mrb[10].mxu1 }
 0x240   :  { %v830_v53 = vmax.f32 %v824_v49, 0.0  ;;  %v828_v54 = vpop.f32.mrb[11].mxu1 }
 0x241   :  { %v831_v55 = vmax.f32 %v826_v51, 0.0 }
 0x242   :  { %v832_v59 = vpack.c.bf16 %v830_v53, %v830_v53  ;;  %v1821_v53 = vld [vmem:[%s2453_s8] ss:$0 sm:$0xff] }
 0x243   :  { %v833_v56 = vpack.c.bf16 %v831_v55, %v831_v55 }
 0x245   :  { %1272 = vmatprep.mubr.bf16.mxu0 %v833_v56  ;;  %1313 = vmatprep.mubr.bf16.mxu1 %v833_v56 }
 0x246   :  { %1273 = vmatmul.mubr.bf16.vlgmr.msra.gmra.mrb[8].mxu0 %v832_v59  ;;  %1314 = vmatmul.mubr.bf16.vlgmr.msra.gmra.mrb[12].mxu1 %v832_v59 }
 0x247   :  { %1923 = vmatpush3.bf16.msra.mxu0 %v2163_v57  ;;  %1945 = vmatpush3.bf16.msra.mxu1 %v2164_v58 }
 0x248   :  { %1924 = vmatprep.subr.bf16.mxu0 %v2165_v60  ;;  %1946 = vmatprep.subr.bf16.mxu1 %v2166_v61 }
 0x24b   :  { %1925 = vmatpush3.bf16.msra.mxu0 %v2167_v62  ;;  %1947 = vmatpush3.bf16.msra.mxu1 %v2168_v63 }
 0x24c   :  { %1926 = vmatprep.subr.bf16.mxu0 %v2169_v0  ;;  %1948 = vmatprep.subr.bf16.mxu1 %v2170_v1 }
 0x24f   :  { %1927 = vmatpush3.bf16.msra.mxu0 %v2171_v2  ;;  %1949 = vmatpush3.bf16.msra.mxu1 %v2172_v3 }
 0x250   :  { %1928 = vmatprep.subr.bf16.mxu0 %v2173_v4  ;;  %1950 = vmatprep.subr.bf16.mxu1 %v2174_v5 }
 0x253   :  { %1929 = vmatpush3.bf16.msra.mxu0 %v2175_v6  ;;  %1951 = vmatpush3.bf16.msra.mxu1 %v2176_v7 }
 0x254   :  { %1930 = vmatprep.subr.bf16.mxu0 %v2177_v8  ;;  %1952 = vmatprep.subr.bf16.mxu1 %v2178_v9 }
 0x257   :  { %1931 = vmatpush3.bf16.msra.mxu0 %v2179_v10  ;;  %1953 = vmatpush3.bf16.msra.mxu1 %v2180_v11 }
 0x258   :  { %1932 = vmatprep.subr.bf16.mxu0 %v2181_v12  ;;  %1954 = vmatprep.subr.bf16.mxu1 %v2182_v13 }
 0x25b   :  { %1933 = vmatpush3.bf16.msra.mxu0 %v2183_v14  ;;  %1955 = vmatpush3.bf16.msra.mxu1 %v2184_v15 }
 0x25c   :  { %1934 = vmatprep.subr.bf16.mxu0 %v2185_v16  ;;  %1956 = vmatprep.subr.bf16.mxu1 %v2186_v17 }
 0x25f   :  { %1935 = vmatpush3.bf16.msra.mxu0 %v2187_v18  ;;  %1957 = vmatpush3.bf16.msra.mxu1 %v2188_v19 }
 0x260   :  { %1936 = vmatprep.subr.bf16.mxu0 %v2189_v20  ;;  %1958 = vmatprep.subr.bf16.mxu1 %v2190_v21 }
 0x263   :  { %1937 = vmatpush3.bf16.msra.mxu0 %v2191_v22  ;;  %1959 = vmatpush3.bf16.msra.mxu1 %v2192_v23 }
 0x319   :  { %v1274_v31 = vpop.f32.mrb[8].mxu0  ;;  %v1315_v32 = vpop.f32.mrb[12].mxu1 }
 0x31a   :  { %v1275_v33 = vadd.f32 %v1274_v31, %v903_v27  ;;  %v1316_v34 = vadd.f32 %v1315_v32, %v911_v28  ;;  %v1276_v35 = vpop.f32.mrb[9].mxu0  ;;  %v1317_v36 = vpop.f32.mrb[13].mxu1 }
 0x31b   :  { %v1277_v37 = vadd.f32 %v1276_v35, %v907_v29  ;;  %v1318_v38 = vadd.f32 %v1317_v36, %v915_v30  ;;  %v1278_v39 = vpop.f32.mrb[10].mxu0  ;;  %v1319_v40 = vpop.f32.mrb[14].mxu1 }
 0x31c   :  { %v1322_v41 = vmax.f32 %v1275_v33, 0.0  ;;  %v1324_v44 = vmax.f32 %v1316_v34, 0.0  ;;  %v1279_v46 = vpop.f32.mrb[11].mxu0  ;;  %v1320_v47 = vpop.f32.mrb[15].mxu1 }
 0x31d   :  { %v1323_v43 = vmax.f32 %v1277_v37, 0.0  ;;  %v1325_v48 = vmax.f32 %v1318_v38, 0.0 }
 0x31e   :  { %v1326_v45 = vpack.c.bf16 %v1322_v41, %v1322_v41  ;;  %v1328_v50 = vpack.c.bf16 %v1324_v44, %v1324_v44 }
 0x31f   :  { %v1327_v49 = vpack.c.bf16 %v1323_v43, %v1323_v43  ;;  %v1329_v42 = vpack.c.bf16 %v1325_v48, %v1325_v48 }
 0x321   :  { %1625 = vmatprep.mubr.bf16.mxu0 %v1327_v49  ;;  %1665 = vmatprep.mubr.bf16.mxu1 %v1329_v42 }
 0x322   :  { %1626 = vmatmul.mubr.bf16.vlgmr.msra.gmra.mrb[12].mxu0 %v1326_v45  ;;  %1666 = vmatmul.mubr.bf16.vlgmr.msra.gmra.mrb[16].mxu1 %v1328_v50 }
 0x3f5   :  { %v1938_v51 = vpop.f32.mrb[12].mxu0  ;;  %v1960_v52 = vpop.f32.mrb[16].mxu1 }
 0x3f6   :  { %v1939_v54 = vpop.f32.mrb[13].mxu0  ;;  %v1961_v55 = vpop.f32.mrb[17].mxu1 }
 0x3f7   :  { %v1940_v56 = vadd.f32 %v1939_v54, %v1938_v51  ;;  %v1962_v57 = vadd.f32 %v1961_v55, %v1960_v52  ;;  %v1941_v58 = vpop.f32.mrb[14].mxu0  ;;  %v1963_v59 = vpop.f32.mrb[18].mxu1 }
 0x3f8   :  { %v1942_v60 = vpop.f32.mrb[15].mxu0  ;;  %v1964_v61 = vpop.f32.mrb[19].mxu1 }
 0x3f9   :  { %v1628_v62 = vadd.f32 %v1940_v56, %v1821_v53 }
 0x3fb   :  { %v1668_v63 = vadd.f32 %v1962_v57, %v1628_v62 }
 0x3fd   :  { %v1673_v0 = vmax.f32 %v1668_v63, 0.0 }
 0x3ff   :  { %v1674_v1 = vpack.c.bf16 %v1673_v0, %v1673_v0 }
 0x401   :  { %1675 = vst [vmem:[%s2454_s9] sm:$0xf] %v1674_v1 }
 0x402   :  { %1680 = vsyncpa [#allocation3], 1 }
 0x403   :  { %1681 = vsyncpa [#allocation5], 1 }
 0x404   :  { %1682 = vsyncpa [#allocation8], 1 }

</bundles_post_ra>
